<compile_context>
chip_gen: v7x
topology: tpu7x:2x2x1
jax: 0.10.0
libtpu: 0.0.40
codegen_flags: <defaults>
</compile_context>

<pallas_src>
import jax
import jax.numpy as jnp
from jax.experimental import pallas as pl
from jax.experimental.pallas import tpu as pltpu


def bionet_kernel(
    x_ref,
    we1_ref, be1_ref,            # encoder L1
    we2_ref, be2_ref,            # encoder L2
    wds_ref, bds_ref,            # fused decoder-L1 | shared trunk   (lat, 2*hid)
    wdt_ref, bdt_ref,            # block-diag decoder-L2 | towers    (2*hid, in_dim+3*out_dim)
    out_ref,                     # output slab: [x_hat | d_A | d_B | d_C]
):
    x = x_ref[...]

    # ---- encoder: z = W2 @ relu(W1 @ x + b1) + b2 ----
    h_e = jnp.maximum(
        jnp.dot(x, we1_ref[...], preferred_element_type=jnp.float32) + be1_ref[...],
        0.0,
    )
    z = jnp.dot(h_e, we2_ref[...], preferred_element_type=jnp.float32) + be2_ref[...]

    # ---- fused decoder-L1 + shared trunk (both consume z, both ReLU) ----
    hs = jnp.maximum(
        jnp.dot(z, wds_ref[...], preferred_element_type=jnp.float32) + bds_ref[...],
        0.0,
    )

    # ---- block-diagonal decoder-L2 | towers: one wide lane-dense matmul + store ----
    #   hs (tile, 2*hid) @ [[wd2, 0], [0, wa|wb|wc]] -> (tile, in_dim + 3*out_dim)
    out_ref[...] = (
        jnp.dot(hs, wdt_ref[...], preferred_element_type=jnp.float32) + bdt_ref[...]
    ).astype(out_ref.dtype)


def _tpu_info():
    """Best-effort (vmem_capacity_bytes, has_multiple_tensorcores)."""
    vmem_cap = 64 << 20          # conservative fallback (v7x per-TC VMEM)
    multi_tc = False
    try:
        info = pltpu.get_tpu_info()
        vmem_cap = int(getattr(info, "vmem_capacity_bytes", vmem_cap))
    except Exception:
        pass
    try:
        kind = jax.devices()[0].device_kind.lower()
        # v7x exposes 2 TensorCores per chip; v4/v5p megacore also shards a
        # "parallel" grid axis.  v5e/v6e are single-TC -> splitting is pure overhead.
        multi_tc = ("v7" in kind) or ("v4" in kind) or ("v5p" in kind)
    except Exception:
        pass
    return vmem_cap, multi_tc


def bionet_forward(x, params, *, batch_tile=None, vmem_limit_bytes=None):
    B, in_dim = x.shape
    hid = params["we1"].shape[1]
    lat = params["we2"].shape[1]
    out_dim = params["wa"].shape[1]
    dtype = x.dtype
    itemsize = jnp.dtype(dtype).itemsize
    out_w = in_dim + 3 * out_dim

    # ---- fuse weights/biases once in the wrapper (grid-invariant inputs) ----
    # decoder-L1 | shared trunk (both consume z, both ReLU): (lat, 2*hid)
    wds = jnp.concatenate([params["wd1"], params["ws"]], axis=1)
    bds = jnp.concatenate([params["bd1"], params["bs"]], axis=1)
    # block-diag [decoder-L2 | towers A,B,C]: (2*hid, in_dim + 3*out_dim)
    wdt = jnp.zeros((2 * hid, out_w), dtype)
    wdt = wdt.at[:hid, :in_dim].set(params["wd2"])
    wdt = wdt.at[hid:, in_dim:].set(
        jnp.concatenate([params["wa"], params["wb"], params["wc"]], axis=1))
    bdt = jnp.concatenate(
        [params["bd2"], params["ba"], params["bb"], params["bc"]], axis=1)

    weight_bytes = (in_dim * hid + hid * lat + lat * 2 * hid + 2 * hid * out_w
                    + hid + lat + 2 * hid + out_w) * itemsize

    vmem_cap, multi_tc = _tpu_info()
    row_align = 16 if dtype == jnp.bfloat16 else 8

    # ---- batch tiling: biggest sublane-aligned tile that fits the VMEM budget ----
    if batch_tile is None:
        per_row = (2 * (in_dim + out_w) * itemsize              # dbl-buffered x / out slab
                   + (hid + lat + 2 * hid + out_w) * 4)         # f32 intermediates
        budget = int(0.5 * vmem_cap) - weight_bytes
        batch_tile = min(8192, max(row_align, budget // max(per_row, 1)))
    batch_tile = min(int(batch_tile), B)
    if batch_tile < B:
        batch_tile = max(row_align, (batch_tile // row_align) * row_align)
    n_steps = pl.cdiv(B, batch_tile)

    if multi_tc and (n_steps % 2 == 1) and B >= 2 * row_align:
        # v7x: both TensorCores share the "parallel" grid axis -> even step count.
        target = 2 if n_steps == 1 else n_steps + 1
        batch_tile = max(
            row_align,
            ((pl.cdiv(B, target) + row_align - 1) // row_align) * row_align,
        )
        n_steps = pl.cdiv(B, batch_tile)

    # ---- VMEM request: double-buffered activations + resident weights + headroom,
    #      capped at ~75% of physical VMEM (~48 MiB on v7x, ~96 MiB on v5e/v6e) ----
    if vmem_limit_bytes is None:
        act = batch_tile * (in_dim + out_w) * itemsize
        interm = batch_tile * (hid + lat + 2 * hid + out_w) * 4
        need = 2 * act + weight_bytes + interm
        vmem_limit_bytes = max(8 << 20, min(int(0.75 * vmem_cap), 2 * need))

    def bcast(shape):
        return pl.BlockSpec(shape, lambda i: (0, 0))

    def btile(d):
        return pl.BlockSpec((batch_tile, d), lambda i: (i, 0))

    out = pl.pallas_call(
        bionet_kernel,
        grid=(n_steps,),
        in_specs=[
            btile(in_dim),                                   # x
            bcast((in_dim, hid)), bcast((1, hid)),           # encoder L1
            bcast((hid, lat)), bcast((1, lat)),              # encoder L2
            bcast((lat, 2 * hid)), bcast((1, 2 * hid)),      # fused decoder-L1 | shared
            bcast((2 * hid, out_w)), bcast((1, out_w)),      # block-diag dec-L2 | towers
        ],
        out_specs=btile(out_w),
        # No wrapper-side padding: the ragged last batch block is masked on write.
        out_shape=jax.ShapeDtypeStruct((B, out_w), dtype),
        compiler_params=pltpu.CompilerParams(
            dimension_semantics=("parallel",),
            vmem_limit_bytes=int(vmem_limit_bytes),
        ),
    )(
        x,
        params["we1"], params["be1"],
        params["we2"], params["be2"],
        wds, bds,
        wdt, bdt,
    )

    x_hat = out[:, :in_dim]
    d_a = out[:, in_dim:in_dim + out_dim]
    d_b = out[:, in_dim + out_dim:in_dim + 2 * out_dim]
    d_c = out[:, in_dim + 2 * out_dim:]
    return x_hat, d_a, d_b, d_c


def init_params(key, in_dim, hid, lat, out_dim, dtype=jnp.float32):
    """PyTorch nn.Linear-style init: U(-1/sqrt(fan_in), +1/sqrt(fan_in))."""
    def linear(k, fan_in, fan_out):
        kw, kb = jax.random.split(k)
        bound = 1.0 / jnp.sqrt(fan_in)
        w = jax.random.uniform(kw, (fan_in, fan_out), dtype, -bound, bound)
        b = jax.random.uniform(kb, (1, fan_out), dtype, -bound, bound)
        return w, b

    keys = jax.random.split(key, 8)
    p = {}
    p["we1"], p["be1"] = linear(keys[0], in_dim, hid)
    p["we2"], p["be2"] = linear(keys[1], hid, lat)
    p["wd1"], p["bd1"] = linear(keys[2], lat, hid)
    p["wd2"], p["bd2"] = linear(keys[3], hid, in_dim)
    p["ws"],  p["bs"]  = linear(keys[4], lat, hid)
    p["wa"],  p["ba"]  = linear(keys[5], hid, out_dim)
    p["wb"],  p["bb"]  = linear(keys[6], hid, out_dim)
    p["wc"],  p["bc"]  = linear(keys[7], hid, out_dim)
    return p


def bionet_reference(x, p):
    """Pure-JAX reference mirroring the PyTorch forward."""
    relu = lambda v: jnp.maximum(v, 0.0)
    z = x @ p["we1"] + p["be1"]
    z = relu(z) @ p["we2"] + p["be2"]
    x_hat = relu(z @ p["wd1"] + p["bd1"]) @ p["wd2"] + p["bd2"]
    s = relu(z @ p["ws"] + p["bs"])
    d_a = s @ p["wa"] + p["ba"]
    d_b = s @ p["wb"] + p["bb"]
    d_c = s @ p["wc"] + p["bc"]
    return x_hat, d_a, d_b, d_c


if __name__ == "__main__":
    B, IN_DIM, HID, LAT, OUT_DIM = 256, 32, 32, 16, 4

    key = jax.random.PRNGKey(0)
    k_x, k_x2, k_p = jax.random.split(key, 3)
    x = jax.random.normal(k_x, (B, IN_DIM), dtype=jnp.float32)
    params = init_params(k_p, IN_DIM, HID, LAT, OUT_DIM)

    # Auto-derived batch tile: one big tile on v5e/v6e, two even tiles on v7x.
    outs = jax.block_until_ready(bionet_forward(x, params))
    refs = bionet_reference(x, params)
    for got, want in zip(outs, refs):
        assert got.shape == want.shape and got.dtype == want.dtype
        assert jnp.max(jnp.abs(got - want)) < 1e-4

    # Ragged-batch path: B=200 with a 128-row tile exercises the masked last block
    # (no wrapper-side jnp.pad; garbage rows are never written back).
    x2 = jax.random.normal(k_x2, (200, IN_DIM), dtype=jnp.float32)
    outs2 = jax.block_until_ready(bionet_forward(x2, params, batch_tile=128))
    refs2 = bionet_reference(x2, params)
    for got, want in zip(outs2, refs2):
        assert got.shape == want.shape and got.dtype == want.dtype
        assert jnp.max(jnp.abs(got - want)) < 1e-4

    print("KERNEL_OK")
</pallas_src>

<mosaic_0001>
module attributes {stable_mosaic.version = 11 : i64} {
  func.func @bionet_kernel(%arg0: i32, %arg1: memref<256x32xf32, #tpu.memory_space<vmem>>, %arg2: memref<32x32xf32, #tpu.memory_space<vmem>>, %arg3: memref<1x32xf32, #tpu.memory_space<vmem>>, %arg4: memref<32x16xf32, #tpu.memory_space<vmem>>, %arg5: memref<1x16xf32, #tpu.memory_space<vmem>>, %arg6: memref<16x64xf32, #tpu.memory_space<vmem>>, %arg7: memref<1x64xf32, #tpu.memory_space<vmem>>, %arg8: memref<64x44xf32, #tpu.memory_space<vmem>>, %arg9: memref<1x44xf32, #tpu.memory_space<vmem>>, %arg10: memref<256x44xf32, #tpu.memory_space<vmem>>) attributes {dimension_semantics = [#tpu.dimension_semantics<parallel>], iteration_bounds = array<i64: 1>, scalar_prefetch = 0 : i64, scratch_operands = 0 : i64, tpu.core_type = #tpu.core_type<tc>, window_params = [{transform_indices = @transform_0, window_bounds = array<i64: 256, 32>}, {pipeline_mode = #tpu.pipeline_mode<synchronous>, transform_indices = @transform_1, window_bounds = array<i64: 32, 32>}, {pipeline_mode = #tpu.pipeline_mode<synchronous>, transform_indices = @transform_2, window_bounds = array<i64: 1, 32>}, {pipeline_mode = #tpu.pipeline_mode<synchronous>, transform_indices = @transform_3, window_bounds = array<i64: 32, 16>}, {pipeline_mode = #tpu.pipeline_mode<synchronous>, transform_indices = @transform_4, window_bounds = array<i64: 1, 16>}, {pipeline_mode = #tpu.pipeline_mode<synchronous>, transform_indices = @transform_5, window_bounds = array<i64: 16, 64>}, {pipeline_mode = #tpu.pipeline_mode<synchronous>, transform_indices = @transform_6, window_bounds = array<i64: 1, 64>}, {pipeline_mode = #tpu.pipeline_mode<synchronous>, transform_indices = @transform_7, window_bounds = array<i64: 64, 44>}, {pipeline_mode = #tpu.pipeline_mode<synchronous>, transform_indices = @transform_8, window_bounds = array<i64: 1, 44>}, {transform_indices = @transform_9, window_bounds = array<i64: 256, 44>}]} {
    %c0 = arith.constant 0 : index
    %c0_0 = arith.constant 0 : index
    %0 = vector.load %arg1[%c0, %c0_0] : memref<256x32xf32, #tpu.memory_space<vmem>>, vector<256x32xf32>
    %c0_1 = arith.constant 0 : index
    %c0_2 = arith.constant 0 : index
    %1 = vector.load %arg2[%c0_1, %c0_2] : memref<32x32xf32, #tpu.memory_space<vmem>>, vector<32x32xf32>
    %cst = arith.constant dense<0.000000e+00> : vector<256x32xf32>
    %2 = tpu.matmul %0, %1, %cst {dimension_numbers = #tpu.dot_dimension_numbers<[1], [0], [0], [1], [0, 0, 1, 1], [], []>} : vector<256x32xf32>, vector<32x32xf32>, vector<256x32xf32> -> vector<256x32xf32>
    %c0_3 = arith.constant 0 : index
    %c0_4 = arith.constant 0 : index
    %3 = vector.load %arg3[%c0_3, %c0_4] : memref<1x32xf32, #tpu.memory_space<vmem>>, vector<1x32xf32>
    %4 = vector.broadcast %3 : vector<1x32xf32> to vector<256x32xf32>
    %5 = arith.addf %2, %4 : vector<256x32xf32>
    %cst_5 = arith.constant 0.000000e+00 : f32
    %6 = vector.broadcast %cst_5 : f32 to vector<256x32xf32>
    %7 = arith.maximumf %5, %6 : vector<256x32xf32>
    %c0_6 = arith.constant 0 : index
    %c0_7 = arith.constant 0 : index
    %8 = vector.load %arg4[%c0_6, %c0_7] : memref<32x16xf32, #tpu.memory_space<vmem>>, vector<32x16xf32>
    %cst_8 = arith.constant dense<0.000000e+00> : vector<256x16xf32>
    %9 = tpu.matmul %7, %8, %cst_8 {dimension_numbers = #tpu.dot_dimension_numbers<[1], [0], [0], [1], [0, 0, 1, 1], [], []>} : vector<256x32xf32>, vector<32x16xf32>, vector<256x16xf32> -> vector<256x16xf32>
    %c0_9 = arith.constant 0 : index
    %c0_10 = arith.constant 0 : index
    %10 = vector.load %arg5[%c0_9, %c0_10] : memref<1x16xf32, #tpu.memory_space<vmem>>, vector<1x16xf32>
    %11 = vector.broadcast %10 : vector<1x16xf32> to vector<256x16xf32>
    %12 = arith.addf %9, %11 : vector<256x16xf32>
    %c0_11 = arith.constant 0 : index
    %c0_12 = arith.constant 0 : index
    %13 = vector.load %arg6[%c0_11, %c0_12] : memref<16x64xf32, #tpu.memory_space<vmem>>, vector<16x64xf32>
    %cst_13 = arith.constant dense<0.000000e+00> : vector<256x64xf32>
    %14 = tpu.matmul %12, %13, %cst_13 {dimension_numbers = #tpu.dot_dimension_numbers<[1], [0], [0], [1], [0, 0, 1, 1], [], []>} : vector<256x16xf32>, vector<16x64xf32>, vector<256x64xf32> -> vector<256x64xf32>
    %c0_14 = arith.constant 0 : index
    %c0_15 = arith.constant 0 : index
    %15 = vector.load %arg7[%c0_14, %c0_15] : memref<1x64xf32, #tpu.memory_space<vmem>>, vector<1x64xf32>
    %16 = vector.broadcast %15 : vector<1x64xf32> to vector<256x64xf32>
    %17 = arith.addf %14, %16 : vector<256x64xf32>
    %cst_16 = arith.constant 0.000000e+00 : f32
    %18 = vector.broadcast %cst_16 : f32 to vector<256x64xf32>
    %19 = arith.maximumf %17, %18 : vector<256x64xf32>
    %c0_17 = arith.constant 0 : index
    %c0_18 = arith.constant 0 : index
    %20 = vector.load %arg8[%c0_17, %c0_18] : memref<64x44xf32, #tpu.memory_space<vmem>>, vector<64x44xf32>
    %cst_19 = arith.constant dense<0.000000e+00> : vector<256x44xf32>
    %21 = tpu.matmul %19, %20, %cst_19 {dimension_numbers = #tpu.dot_dimension_numbers<[1], [0], [0], [1], [0, 0, 1, 1], [], []>} : vector<256x64xf32>, vector<64x44xf32>, vector<256x44xf32> -> vector<256x44xf32>
    %c0_20 = arith.constant 0 : index
    %c0_21 = arith.constant 0 : index
    %22 = vector.load %arg9[%c0_20, %c0_21] : memref<1x44xf32, #tpu.memory_space<vmem>>, vector<1x44xf32>
    %23 = vector.broadcast %22 : vector<1x44xf32> to vector<256x44xf32>
    %24 = arith.addf %21, %23 : vector<256x44xf32>
    %c0_22 = arith.constant 0 : index
    %c0_23 = arith.constant 0 : index
    %25 = vector.load %arg10[%c0_22, %c0_23] : memref<256x44xf32, #tpu.memory_space<vmem>>, vector<256x44xf32>
    tpu.vector_store %arg10[%c0_22, %c0_23], %24 {strides = array<i32>} : memref<256x44xf32, #tpu.memory_space<vmem>>, vector<256x44xf32>,
    return
  }
  func.func @transform_0(%arg0: i32) -> (i32, i32) {
    %c0_i32 = arith.constant 0 : i32
    %c0_i32_0 = arith.constant 0 : i32
    return %arg0, %c0_i32 : i32, i32
  }
  func.func @transform_1(%arg0: i32) -> (i32, i32) {
    %c0_i32 = arith.constant 0 : i32
    %c0_i32_0 = arith.constant 0 : i32
    %c0_i32_1 = arith.constant 0 : i32
    return %c0_i32, %c0_i32_0 : i32, i32
  }
  func.func @transform_2(%arg0: i32) -> (i32, i32) {
    %c0_i32 = arith.constant 0 : i32
    %c0_i32_0 = arith.constant 0 : i32
    %c0_i32_1 = arith.constant 0 : i32
    return %c0_i32, %c0_i32_0 : i32, i32
  }
  func.func @transform_3(%arg0: i32) -> (i32, i32) {
    %c0_i32 = arith.constant 0 : i32
    %c0_i32_0 = arith.constant 0 : i32
    %c0_i32_1 = arith.constant 0 : i32
    return %c0_i32, %c0_i32_0 : i32, i32
  }
  func.func @transform_4(%arg0: i32) -> (i32, i32) {
    %c0_i32 = arith.constant 0 : i32
    %c0_i32_0 = arith.constant 0 : i32
    %c0_i32_1 = arith.constant 0 : i32
    return %c0_i32, %c0_i32_0 : i32, i32
  }
  func.func @transform_5(%arg0: i32) -> (i32, i32) {
    %c0_i32 = arith.constant 0 : i32
    %c0_i32_0 = arith.constant 0 : i32
    %c0_i32_1 = arith.constant 0 : i32
    return %c0_i32, %c0_i32_0 : i32, i32
  }
  func.func @transform_6(%arg0: i32) -> (i32, i32) {
    %c0_i32 = arith.constant 0 : i32
    %c0_i32_0 = arith.constant 0 : i32
    %c0_i32_1 = arith.constant 0 : i32
    return %c0_i32, %c0_i32_0 : i32, i32
  }
  func.func @transform_7(%arg0: i32) -> (i32, i32) {
    %c0_i32 = arith.constant 0 : i32
    %c0_i32_0 = arith.constant 0 : i32
    %c0_i32_1 = arith.constant 0 : i32
    return %c0_i32, %c0_i32_0 : i32, i32
  }
  func.func @transform_8(%arg0: i32) -> (i32, i32) {
    %c0_i32 = arith.constant 0 : i32
    %c0_i32_0 = arith.constant 0 : i32
    %c0_i32_1 = arith.constant 0 : i32
    return %c0_i32, %c0_i32_0 : i32, i32
  }
  func.func @transform_9(%arg0: i32) -> (i32, i32) {
    %c0_i32 = arith.constant 0 : i32
    %c0_i32_0 = arith.constant 0 : i32
    return %arg0, %c0_i32 : i32, i32
  }
}

</mosaic_0001>

<bundles_post_ra>
// kernel: tpu_custom_call.1
= control target key start
LH: loop header
LB: loop body
LE: loop exit
PB: predicated region body
PF: predicated region fallthrough
CT: control target
= control target key end

     0   :  { %vm75_vm0 = vcmask 261120   ;;  %vm770_vm1 = vcmask 130048   ;;  %vm1139_vm2 = vcmask 523264   ;;  %vm1461_vm3 = vcmask 359424   ;;  %s2644_s1 = inlined_call_operand.vmem [shape: f32[32,32], index: 1, kind: input, shape index: {}]   ;;  %s2645_s0 = inlined_call_operand.vmem [shape: f32[256,32], index: 0, kind: input, shape index: {}]   ;;  %s2646_s3 = inlined_call_operand.vmem [shape: f32[32,16], index: 3, kind: input, shape index: {}]   ;;  %s2647_s5 = inlined_call_operand.vmem [shape: f32[16,64], index: 5, kind: input, shape index: {}]   ;;  %s2648_s2 = inlined_call_operand.vmem [shape: f32[1,32], index: 2, kind: input, shape index: {}]   ;;  %s2649_s7 = inlined_call_operand.vmem [shape: f32[64,44], index: 7, kind: input, shape index: {}]   ;;  %s2650_s4 = inlined_call_operand.vmem [shape: f32[1,16], index: 4, kind: input, shape index: {}]   ;;  %s2651_s6 = inlined_call_operand.vmem [shape: f32[1,64], index: 6, kind: input, shape index: {}]   ;;  %s2652_s8 = inlined_call_operand.vmem [shape: f32[1,44], index: 8, kind: input, shape index: {}]   ;;  %s2653_s9 = inlined_call_operand.vmem [shape: f32[256,44], index: 9, kind: output, shape index: {}]  }
   0x1   :  { %v64_v0 = vld [vmem:[%s2644_s1] sm:$0xff]  ;;  %v65_v1 = vld [vmem:[%s2644_s1 + $0x8] sm:$0xff]  ;;  %v66_v2 = vld [vmem:[%s2644_s1 + $0x10] sm:$0xff] }
   0x2   :  { %v2004_v3 = vpack.c.bf16 %v65_v1, %v64_v0  ;;  %v67_v4 = vld [vmem:[%s2644_s1 + $0x18] sm:$0xff]  ;;  %v32_v5 = vld [vmem:[%s2645_s0] sm:$0xff]  ;;  %v33_v7 = vld [vmem:[%s2645_s0 + $0x8] sm:$0xff] }
   0x3   :  { %v2008_v6 = vpack.c.bf16 %v67_v4, %v66_v2  ;;  %1784 = vmatprep.mubr.msk.f32.mxu0 %vm75_vm0, %v32_v5  ;;  %v34_v8 = vld [vmem:[%s2645_s0 + $0x10] sm:$0xff]  ;;  %v35_v9 = vld [vmem:[%s2645_s0 + $0x18] sm:$0xff]  ;;  %v429_v10 = vld [vmem:[%s2646_s3] sm:$0xff] }
   0x4   :  { %2005 = vmatprep.subr.bf16.mxu0 %v2004_v3  ;;  %v430_v11 = vld [vmem:[%s2646_s3 + $0x8] sm:$0xff]  ;;  %v36_v12 = vld [vmem:[%s2645_s0 + $0x20] sm:$0xff]  ;;  %v38_v15 = vld [vmem:[%s2645_s0 + $0x30] sm:$0xff] }
   0x5   :  { %2007 = vmatpush3.bf16.msra.mxu0 %v2004_v3  ;;  %v2012_v13 = vpack.c.bf16 %v430_v11, %v429_v10  ;;  %v37_v14 = vld [vmem:[%s2645_s0 + $0x28] sm:$0xff]  ;;  %v39_v16 = vld [vmem:[%s2645_s0 + $0x38] sm:$0xff]  ;;  %v40_v17 = vld [vmem:[%s2645_s0 + $0x40] sm:$0xff] }
   0x6   :  { %2009 = vmatprep.subr.bf16.mxu0 %v2008_v6  ;;  %v41_v18 = vld [vmem:[%s2645_s0 + $0x48] sm:$0xff]  ;;  %v42_v19 = vld [vmem:[%s2645_s0 + $0x50] sm:$0xff]  ;;  %v43_v20 = vld [vmem:[%s2645_s0 + $0x58] sm:$0xff] }
   0x7   :  { %2013 = vmatprep.subr.bf16.mxu1 %v2012_v13  ;;  %v44_v21 = vld [vmem:[%s2645_s0 + $0x60] sm:$0xff]  ;;  %v45_v22 = vld [vmem:[%s2645_s0 + $0x68] sm:$0xff]  ;;  %v46_v23 = vld [vmem:[%s2645_s0 + $0x70] sm:$0xff] }
   0x8   :  { %2015 = vmatpush3.bf16.msra.mxu1 %v2012_v13  ;;  %v47_v24 = vld [vmem:[%s2645_s0 + $0x78] sm:$0xff]  ;;  %v48_v25 = vld [vmem:[%s2645_s0 + $0x80] sm:$0xff]  ;;  %v49_v26 = vld [vmem:[%s2645_s0 + $0x88] sm:$0xff] }
   0x9   :  { %2011 = vmatpush3.bf16.msra.mxu0 %v2008_v6  ;;  %v50_v27 = vld [vmem:[%s2645_s0 + $0x90] sm:$0xff]  ;;  %v51_v28 = vld [vmem:[%s2645_s0 + $0x98] sm:$0xff]  ;;  %v52_v29 = vld [vmem:[%s2645_s0 + $0xa0] sm:$0xff] }
   0xa   :  { %v53_v30 = vld [vmem:[%s2645_s0 + $0xa8] sm:$0xff]  ;;  %v54_v31 = vld [vmem:[%s2645_s0 + $0xb0] sm:$0xff]  ;;  %v55_v32 = vld [vmem:[%s2645_s0 + $0xb8] sm:$0xff] }
   0xb   :  { %v56_v33 = vld [vmem:[%s2645_s0 + $0xc0] sm:$0xff]  ;;  %v57_v34 = vld [vmem:[%s2645_s0 + $0xc8] sm:$0xff]  ;;  %v58_v35 = vld [vmem:[%s2645_s0 + $0xd0] sm:$0xff] }
   0xc   :  { %1785 = vmatmul.mubr.msk.f32.vlgmr.msra.gmra.mrb[0].mxu0 %vm75_vm0, %v33_v7  ;;  %v59_v36 = vld [vmem:[%s2645_s0 + $0xd8] sm:$0xff]  ;;  %v60_v37 = vld [vmem:[%s2645_s0 + $0xe0] sm:$0xff]  ;;  %v61_v38 = vld [vmem:[%s2645_s0 + $0xe8] sm:$0xff] }
   0xd   :  { %1787 = vmatprep.mubr.msk.f32.mxu0 %vm75_vm0, %v34_v8  ;;  %v62_v39 = vld [vmem:[%s2645_s0 + $0xf0] sm:$0xff]  ;;  %v63_v40 = vld [vmem:[%s2645_s0 + $0xf8] sm:$0xff]  ;;  %v761_v44 = vld [vmem:[%s2647_s5] sm:$0xff] }
   0xe   :  { %v431_v41 = vld [vmem:[%s2646_s3 + $0x10] sm:$0xff]  ;;  %v432_v42 = vld [vmem:[%s2646_s3 + $0x18] sm:$0xff]  ;;  %v762_v45 = vld [vmem:[%s2647_s5 + $0x8] sm:$0xff] }
   0xf   :  { %v2016_v43 = vpack.c.bf16 %v432_v42, %v431_v41  ;;  %v2020_v46 = vpack.c.bf16 %v762_v45, %v761_v44  ;;  %v2251_v47 = vld [vmem:[%s2648_s2] ss:$0 sm:$0xff] }
  0x10   :  { %1788 = vmatmul.mubr.msk.f32.gmra.mrb[2].mxu0 %vm75_vm0, %v35_v9 }
  0x11   :  { %1790 = vmatprep.mubr.msk.f32.mxu0 %vm75_vm0, %v36_v12  ;;  %2017 = vmatprep.subr.bf16.mxu1 %v2016_v43 }
  0x12   :  { %2019 = vmatpush3.bf16.msra.mxu1 %v2016_v43  ;;  %2021 = vmatprep.subr.bf16.mxu0 %v2020_v46 }
  0x13   :  { %2023 = vmatpush3.bf16.msra.mxu0 %v2020_v46 }
  0x14   :  { %1791 = vmatmul.mubr.msk.f32.gmra.mrb[4].mxu0 %vm75_vm0, %v37_v14 }
  0x15   :  { %1793 = vmatprep.mubr.msk.f32.mxu0 %vm75_vm0, %v38_v15 }
  0x18   :  { %1794 = vmatmul.mubr.msk.f32.gmra.mrb[6].mxu0 %vm75_vm0, %v39_v16 }
  0x19   :  { %1796 = vmatprep.mubr.msk.f32.mxu0 %vm75_vm0, %v40_v17 }
  0x1c   :  { %1797 = vmatmul.mubr.msk.f32.gmra.mrb[8].mxu0 %vm75_vm0, %v41_v18 }
  0x1d   :  { %1799 = vmatprep.mubr.msk.f32.mxu0 %vm75_vm0, %v42_v19 }
  0x20   :  { %1800 = vmatmul.mubr.msk.f32.gmra.mrb[10].mxu0 %vm75_vm0, %v43_v20 }
  0x21   :  { %1802 = vmatprep.mubr.msk.f32.mxu0 %vm75_vm0, %v44_v21 }
  0x24   :  { %1803 = vmatmul.mubr.msk.f32.gmra.mrb[12].mxu0 %vm75_vm0, %v45_v22 }
  0x25   :  { %1805 = vmatprep.mubr.msk.f32.mxu0 %vm75_vm0, %v46_v23 }
  0x28   :  { %1806 = vmatmul.mubr.msk.f32.gmra.mrb[14].mxu0 %vm75_vm0, %v47_v24 }
  0x29   :  { %1808 = vmatprep.mubr.msk.f32.mxu0 %vm75_vm0, %v48_v25 }
  0x2c   :  { %1809 = vmatmul.mubr.msk.f32.gmra.mrb[16].mxu0 %vm75_vm0, %v49_v26 }
  0x2d   :  { %1811 = vmatprep.mubr.msk.f32.mxu0 %vm75_vm0, %v50_v27 }
  0x30   :  { %1812 = vmatmul.mubr.msk.f32.gmra.mrb[18].mxu0 %vm75_vm0, %v51_v28 }
  0x31   :  { %1814 = vmatprep.mubr.msk.f32.mxu0 %vm75_vm0, %v52_v29 }
  0x34   :  { %1815 = vmatmul.mubr.msk.f32.gmra.mrb[20].mxu0 %vm75_vm0, %v53_v30 }
  0x35   :  { %1817 = vmatprep.mubr.msk.f32.mxu0 %vm75_vm0, %v54_v31 }
  0x38   :  { %1818 = vmatmul.mubr.msk.f32.gmra.mrb[22].mxu0 %vm75_vm0, %v55_v32 }
  0x39   :  { %1820 = vmatprep.mubr.msk.f32.mxu0 %vm75_vm0, %v56_v33 }
  0x3c   :  { %1821 = vmatmul.mubr.msk.f32.gmra.mrb[24].mxu0 %vm75_vm0, %v57_v34 }
  0x3d   :  { %1823 = vmatprep.mubr.msk.f32.mxu0 %vm75_vm0, %v58_v35 }
  0x40   :  { %1824 = vmatmul.mubr.msk.f32.gmra.mrb[26].mxu0 %vm75_vm0, %v59_v36 }
  0x41   :  { %1826 = vmatprep.mubr.msk.f32.mxu0 %vm75_vm0, %v60_v37 }
  0x44   :  { %1827 = vmatmul.mubr.msk.f32.gmra.mrb[28].mxu0 %vm75_vm0, %v61_v38 }
  0x45   :  { %1829 = vmatprep.mubr.msk.f32.mxu0 %vm75_vm0, %v62_v39 }
  0x48   :  { %1830 = vmatmul.mubr.msk.f32.gmra.mrb[30].mxu0 %vm75_vm0, %v63_v40 }
  0xdf   :  { %v1786_v48 = vpop.f32.mrb[0].mxu0 }
  0xe0   :  { %v244_v49 = vadd.f32 %v1786_v48, %v2251_v47  ;;  %v238_v50 = vpop.f32.mrb[1].mxu0 }
  0xe1   :  { %v239_v51 = vadd.f32 %v2251_v47, %v238_v50 }
  0xe2   :  { %v398_v54 = vmax.f32 %v244_v49, 0.0 }
  0xe3   :  { %v397_v52 = vmax.f32 %v239_v51, 0.0  ;;  %v1789_v53 = vpop.f32.mrb[2].mxu0 }
  0xe4   :  { %v254_v55 = vadd.f32 %v1789_v53, %v2251_v47  ;;  %v248_v56 = vpop.f32.mrb[3].mxu0 }
  0xe5   :  { %v249_v57 = vadd.f32 %v2251_v47, %v248_v56  ;;  %1840 = vmatprep.mubr.msk.f32.mxu1 %vm75_vm0, %v397_v52 }
  0xe6   :  { %1841 = vmatmul.mubr.msk.f32.vlgmr.msra.gmra.mrb[0].mxu1 %vm75_vm0, %v398_v54  ;;  %v400_v60 = vmax.f32 %v254_v55, 0.0 }
  0xe7   :  { %v399_v58 = vmax.f32 %v249_v57, 0.0  ;;  %v1792_v59 = vpop.f32.mrb[4].mxu0 }
  0xe8   :  { %v264_v61 = vadd.f32 %v1792_v59, %v2251_v47  ;;  %v258_v62 = vpop.f32.mrb[5].mxu0 }
  0xe9   :  { %v259_v63 = vadd.f32 %v2251_v47, %v258_v62  ;;  %1843 = vmatprep.mubr.msk.f32.mxu1 %vm75_vm0, %v399_v58 }
  0xea   :  { %1844 = vmatmul.mubr.msk.f32.gmra.mrb[2].mxu1 %vm75_vm0, %v400_v60  ;;  %v402_v2 = vmax.f32 %v264_v61, 0.0 }
  0xeb   :  { %v401_v0 = vmax.f32 %v259_v63, 0.0  ;;  %v1795_v1 = vpop.f32.mrb[6].mxu0 }
  0xec   :  { %v274_v3 = vadd.f32 %v1795_v1, %v2251_v47  ;;  %v268_v4 = vpop.f32.mrb[7].mxu0 }
  0xed   :  { %v269_v5 = vadd.f32 %v2251_v47, %v268_v4  ;;  %1846 = vmatprep.mubr.msk.f32.mxu1 %vm75_vm0, %v401_v0 }
  0xee   :  { %1847 = vmatmul.mubr.msk.f32.gmra.mrb[4].mxu1 %vm75_vm0, %v402_v2  ;;  %v404_v8 = vmax.f32 %v274_v3, 0.0 }
  0xef   :  { %v403_v6 = vmax.f32 %v269_v5, 0.0  ;;  %v1798_v7 = vpop.f32.mrb[8].mxu0 }
  0xf0   :  { %v284_v9 = vadd.f32 %v1798_v7, %v2251_v47  ;;  %v278_v10 = vpop.f32.mrb[9].mxu0 }
  0xf1   :  { %v279_v11 = vadd.f32 %v2251_v47, %v278_v10  ;;  %1849 = vmatprep.mubr.msk.f32.mxu1 %vm75_vm0, %v403_v6 }
  0xf2   :  { %1850 = vmatmul.mubr.msk.f32.gmra.mrb[6].mxu1 %vm75_vm0, %v404_v8  ;;  %v406_v14 = vmax.f32 %v284_v9, 0.0 }
  0xf3   :  { %v405_v12 = vmax.f32 %v279_v11, 0.0  ;;  %v1801_v13 = vpop.f32.mrb[10].mxu0 }
  0xf4   :  { %v294_v15 = vadd.f32 %v1801_v13, %v2251_v47  ;;  %v288_v16 = vpop.f32.mrb[11].mxu0 }
  0xf5   :  { %v289_v17 = vadd.f32 %v2251_v47, %v288_v16  ;;  %1852 = vmatprep.mubr.msk.f32.mxu1 %vm75_vm0, %v405_v12 }
  0xf6   :  { %1853 = vmatmul.mubr.msk.f32.gmra.mrb[8].mxu1 %vm75_vm0, %v406_v14  ;;  %v408_v20 = vmax.f32 %v294_v15, 0.0 }
  0xf7   :  { %v407_v18 = vmax.f32 %v289_v17, 0.0  ;;  %v1804_v19 = vpop.f32.mrb[12].mxu0  ;;  %v1124_v17 = vld [vmem:[%s2649_s7] sm:$0xff] }
  0xf8   :  { %v304_v21 = vadd.f32 %v1804_v19, %v2251_v47  ;;  %v298_v22 = vpop.f32.mrb[13].mxu0 }
  0xf9   :  { %v299_v23 = vadd.f32 %v2251_v47, %v298_v22  ;;  %1855 = vmatprep.mubr.msk.f32.mxu1 %vm75_vm0, %v407_v18  ;;  %v1125_v18 = vld [vmem:[%s2649_s7 + $0x8] sm:$0xff]  ;;  %v1128_v22 = vld [vmem:[%s2649_s7 + $0x20] sm:$0xff] }
  0xfa   :  { %1856 = vmatmul.mubr.msk.f32.gmra.mrb[10].mxu1 %vm75_vm0, %v408_v20  ;;  %v410_v26 = vmax.f32 %v304_v21, 0.0  ;;  %v2024_v19 = vpack.c.bf16 %v1125_v18, %v1124_v17  ;;  %v1127_v20 = vld [vmem:[%s2649_s7 + $0x18] sm:$0xff] }
  0xfb   :  { %v409_v24 = vmax.f32 %v299_v23, 0.0  ;;  %v1807_v25 = vpop.f32.mrb[14].mxu0  ;;  %v1129_v23 = vld [vmem:[%s2649_s7 + $0x28] sm:$0xff] }
  0xfc   :  { %v314_v27 = vadd.f32 %v1807_v25, %v2251_v47  ;;  %v308_v28 = vpop.f32.mrb[15].mxu0  ;;  %2025 = vmatprep.subr.bf16.mxu1 %v2024_v19  ;;  %v1130_v25 = vld [vmem:[%s2649_s7 + $0x30] sm:$0xff] }
  0xfd   :  { %v309_v29 = vadd.f32 %v2251_v47, %v308_v28  ;;  %1858 = vmatprep.mubr.msk.f32.mxu1 %vm75_vm0, %v409_v24  ;;  %2027 = vmatpush3.bf16.msra.mxu1 %v2024_v19  ;;  %v2032_v24 = vpack.c.bf16 %v1129_v23, %v1128_v22  ;;  %v2344_v28 = vld [vmem:[%s2650_s4] ss:$0 sm:$0xff] }
  0xfe   :  { %1859 = vmatmul.mubr.msk.f32.gmra.mrb[12].mxu1 %vm75_vm0, %v410_v26  ;;  %v412_v32 = vmax.f32 %v314_v27, 0.0  ;;  %v1131_v26 = vld [vmem:[%s2649_s7 + $0x38] sm:$0xff] }
  0xff   :  { %v411_v30 = vmax.f32 %v309_v29, 0.0  ;;  %v1810_v31 = vpop.f32.mrb[16].mxu0  ;;  %v2036_v27 = vpack.c.bf16 %v1131_v26, %v1130_v25 }
 0x100   :  { %v324_v33 = vadd.f32 %v1810_v31, %v2251_v47  ;;  %v318_v34 = vpop.f32.mrb[17].mxu0 }
 0x101   :  { %v319_v35 = vadd.f32 %v2251_v47, %v318_v34  ;;  %1861 = vmatprep.mubr.msk.f32.mxu1 %vm75_vm0, %v411_v30 }
 0x102   :  { %1862 = vmatmul.mubr.msk.f32.gmra.mrb[14].mxu1 %vm75_vm0, %v412_v32  ;;  %v414_v38 = vmax.f32 %v324_v33, 0.0 }
 0x103   :  { %v413_v36 = vmax.f32 %v319_v35, 0.0  ;;  %v1813_v37 = vpop.f32.mrb[18].mxu0 }
 0x104   :  { %v334_v39 = vadd.f32 %v1813_v37, %v2251_v47  ;;  %v328_v40 = vpop.f32.mrb[19].mxu0 }
 0x105   :  { %v329_v41 = vadd.f32 %v2251_v47, %v328_v40  ;;  %1864 = vmatprep.mubr.msk.f32.mxu1 %vm75_vm0, %v413_v36 }
 0x106   :  { %1865 = vmatmul.mubr.msk.f32.gmra.mrb[16].mxu1 %vm75_vm0, %v414_v38  ;;  %v416_v44 = vmax.f32 %v334_v39, 0.0 }
 0x107   :  { %v415_v42 = vmax.f32 %v329_v41, 0.0  ;;  %v1816_v43 = vpop.f32.mrb[20].mxu0 }
 0x108   :  { %v344_v45 = vadd.f32 %v1816_v43, %v2251_v47  ;;  %v338_v46 = vpop.f32.mrb[21].mxu0 }
 0x109   :  { %v339_v48 = vadd.f32 %v2251_v47, %v338_v46  ;;  %1867 = vmatprep.mubr.msk.f32.mxu1 %vm75_vm0, %v415_v42 }
 0x10a   :  { %1868 = vmatmul.mubr.msk.f32.gmra.mrb[18].mxu1 %vm75_vm0, %v416_v44  ;;  %v418_v51 = vmax.f32 %v344_v45, 0.0 }
 0x10b   :  { %v417_v49 = vmax.f32 %v339_v48, 0.0  ;;  %v1819_v50 = vpop.f32.mrb[22].mxu0 }
 0x10c   :  { %v354_v52 = vadd.f32 %v1819_v50, %v2251_v47  ;;  %v348_v53 = vpop.f32.mrb[23].mxu0 }
 0x10d   :  { %v349_v54 = vadd.f32 %v2251_v47, %v348_v53  ;;  %1870 = vmatprep.mubr.msk.f32.mxu1 %vm75_vm0, %v417_v49 }
 0x10e   :  { %1871 = vmatmul.mubr.msk.f32.gmra.mrb[20].mxu1 %vm75_vm0, %v418_v51  ;;  %v420_v57 = vmax.f32 %v354_v52, 0.0 }
 0x10f   :  { %v419_v55 = vmax.f32 %v349_v54, 0.0  ;;  %v1822_v56 = vpop.f32.mrb[24].mxu0 }
 0x110   :  { %v364_v58 = vadd.f32 %v1822_v56, %v2251_v47  ;;  %v358_v59 = vpop.f32.mrb[25].mxu0 }
 0x111   :  { %v359_v60 = vadd.f32 %v2251_v47, %v358_v59  ;;  %1873 = vmatprep.mubr.msk.f32.mxu1 %vm75_vm0, %v419_v55 }
 0x112   :  { %1874 = vmatmul.mubr.msk.f32.gmra.mrb[22].mxu1 %vm75_vm0, %v420_v57  ;;  %v422_v63 = vmax.f32 %v364_v58, 0.0 }
 0x113   :  { %v421_v61 = vmax.f32 %v359_v60, 0.0  ;;  %v1825_v62 = vpop.f32.mrb[26].mxu0 }
 0x114   :  { %v374_v0 = vadd.f32 %v1825_v62, %v2251_v47  ;;  %v368_v1 = vpop.f32.mrb[27].mxu0 }
 0x115   :  { %v369_v2 = vadd.f32 %v2251_v47, %v368_v1  ;;  %1876 = vmatprep.mubr.msk.f32.mxu1 %vm75_vm0, %v421_v61 }
 0x116   :  { %1877 = vmatmul.mubr.msk.f32.gmra.mrb[24].mxu1 %vm75_vm0, %v422_v63  ;;  %v424_v5 = vmax.f32 %v374_v0, 0.0 }
 0x117   :  { %v423_v3 = vmax.f32 %v369_v2, 0.0  ;;  %v1828_v4 = vpop.f32.mrb[28].mxu0 }
 0x118   :  { %v384_v6 = vadd.f32 %v1828_v4, %v2251_v47  ;;  %v378_v7 = vpop.f32.mrb[29].mxu0 }
 0x119   :  { %v379_v8 = vadd.f32 %v2251_v47, %v378_v7  ;;  %1879 = vmatprep.mubr.msk.f32.mxu1 %vm75_vm0, %v423_v3 }
 0x11a   :  { %1880 = vmatmul.mubr.msk.f32.gmra.mrb[26].mxu1 %vm75_vm0, %v424_v5  ;;  %v426_v11 = vmax.f32 %v384_v6, 0.0 }
 0x11b   :  { %v425_v9 = vmax.f32 %v379_v8, 0.0  ;;  %v1831_v10 = vpop.f32.mrb[30].mxu0 }
 0x11c   :  { %v394_v12 = vadd.f32 %v1831_v10, %v2251_v47  ;;  %v388_v13 = vpop.f32.mrb[31].mxu0 }
 0x11d   :  { %v389_v14 = vadd.f32 %v2251_v47, %v388_v13  ;;  %1882 = vmatprep.mubr.msk.f32.mxu1 %vm75_vm0, %v425_v9  ;;  %v1126_v47 = vld [vmem:[%s2649_s7 + $0x10] sm:$0xff] }
 0x11e   :  { %1883 = vmatmul.mubr.msk.f32.gmra.mrb[28].mxu1 %vm75_vm0, %v426_v11  ;;  %v428_v16 = vmax.f32 %v394_v12, 0.0  ;;  %v2028_v21 = vpack.c.bf16 %v1127_v20, %v1126_v47 }
 0x11f   :  { %v427_v15 = vmax.f32 %v389_v14, 0.0 }
 0x120   :  { %2029 = vmatprep.subr.bf16.mxu1 %v2028_v21 }
 0x121   :  { %1885 = vmatprep.mubr.msk.f32.mxu1 %vm75_vm0, %v427_v15  ;;  %2031 = vmatpush3.bf16.msra.mxu1 %v2028_v21 }
 0x122   :  { %1886 = vmatmul.mubr.msk.f32.gmra.mrb[30].mxu1 %vm75_vm0, %v428_v16  ;;  %2033 = vmatprep.subr.bf16.mxu1 %v2032_v24 }
 0x125   :  { %2035 = vmatpush3.bf16.msra.mxu1 %v2032_v24 }
 0x126   :  { %2037 = vmatprep.subr.bf16.mxu1 %v2036_v27 }
 0x129   :  { %2039 = vmatpush3.bf16.msra.mxu1 %v2036_v27 }
 0x1b9   :  { %v1842_v29 = vpop.f32.mrb[0].mxu1 }
 0x1ba   :  { %v602_v30 = vpop.f32.mrb[1].mxu1  ;;  %v608_v32 = vadd.f32 %v1842_v29, %v2344_v28 }
 0x1bb   :  { %v603_v31 = vadd.f32 %v2344_v28, %v602_v30  ;;  %v2413_v30 = vld [vmem:[%s2651_s6] ss:$0 sm:$0xff] }
 0x1bd   :  { %v1845_v33 = vpop.f32.mrb[2].mxu1  ;;  %1892 = vmatprep.mubr.msk.f32.mxu0 %vm770_vm1, %v603_v31 }
 0x1be   :  { %v612_v34 = vpop.f32.mrb[3].mxu1  ;;  %1893 = vmatmul.mubr.msk.f32.vlgmr.msra.gmra.mrb[32].mxu0 %vm770_vm1, %v608_v32  ;;  %v618_v36 = vadd.f32 %v1845_v33, %v2344_v28 }
 0x1bf   :  { %v613_v35 = vadd.f32 %v2344_v28, %v612_v34 }
 0x1c1   :  { %v1848_v37 = vpop.f32.mrb[4].mxu1  ;;  %1895 = vmatprep.mubr.msk.f32.mxu0 %vm770_vm1, %v613_v35 }
 0x1c2   :  { %v622_v38 = vpop.f32.mrb[5].mxu1  ;;  %1896 = vmatmul.mubr.msk.f32.gmra.mrb[34].mxu0 %vm770_vm1, %v618_v36  ;;  %v628_v40 = vadd.f32 %v1848_v37, %v2344_v28 }
 0x1c3   :  { %v623_v39 = vadd.f32 %v2344_v28, %v622_v38 }
 0x1c5   :  { %v1851_v41 = vpop.f32.mrb[6].mxu1  ;;  %1898 = vmatprep.mubr.msk.f32.mxu0 %vm770_vm1, %v623_v39 }
 0x1c6   :  { %v632_v42 = vpop.f32.mrb[7].mxu1  ;;  %1899 = vmatmul.mubr.msk.f32.gmra.mrb[36].mxu0 %vm770_vm1, %v628_v40  ;;  %v638_v44 = vadd.f32 %v1851_v41, %v2344_v28 }
 0x1c7   :  { %v633_v43 = vadd.f32 %v2344_v28, %v632_v42 }
 0x1c9   :  { %v1854_v45 = vpop.f32.mrb[8].mxu1  ;;  %1901 = vmatprep.mubr.msk.f32.mxu0 %vm770_vm1, %v633_v43 }
 0x1ca   :  { %v642_v46 = vpop.f32.mrb[9].mxu1  ;;  %1902 = vmatmul.mubr.msk.f32.gmra.mrb[38].mxu0 %vm770_vm1, %v638_v44  ;;  %v648_v49 = vadd.f32 %v1854_v45, %v2344_v28 }
 0x1cb   :  { %v643_v48 = vadd.f32 %v2344_v28, %v642_v46 }
 0x1cd   :  { %v1857_v50 = vpop.f32.mrb[10].mxu1  ;;  %1904 = vmatprep.mubr.msk.f32.mxu0 %vm770_vm1, %v643_v48 }
 0x1ce   :  { %v652_v51 = vpop.f32.mrb[11].mxu1  ;;  %1905 = vmatmul.mubr.msk.f32.gmra.mrb[40].mxu0 %vm770_vm1, %v648_v49  ;;  %v658_v53 = vadd.f32 %v1857_v50, %v2344_v28 }
 0x1cf   :  { %v653_v52 = vadd.f32 %v2344_v28, %v652_v51 }
 0x1d1   :  { %v1860_v54 = vpop.f32.mrb[12].mxu1  ;;  %1907 = vmatprep.mubr.msk.f32.mxu0 %vm770_vm1, %v653_v52 }
 0x1d2   :  { %v662_v55 = vpop.f32.mrb[13].mxu1  ;;  %1908 = vmatmul.mubr.msk.f32.gmra.mrb[42].mxu0 %vm770_vm1, %v658_v53  ;;  %v668_v57 = vadd.f32 %v1860_v54, %v2344_v28 }
 0x1d3   :  { %v663_v56 = vadd.f32 %v2344_v28, %v662_v55 }
 0x1d5   :  { %v1863_v58 = vpop.f32.mrb[14].mxu1  ;;  %1910 = vmatprep.mubr.msk.f32.mxu0 %vm770_vm1, %v663_v56 }
 0x1d6   :  { %v672_v59 = vpop.f32.mrb[15].mxu1  ;;  %1911 = vmatmul.mubr.msk.f32.gmra.mrb[44].mxu0 %vm770_vm1, %v668_v57  ;;  %v678_v61 = vadd.f32 %v1863_v58, %v2344_v28 }
 0x1d7   :  { %v673_v60 = vadd.f32 %v2344_v28, %v672_v59 }
 0x1d9   :  { %v1866_v62 = vpop.f32.mrb[16].mxu1  ;;  %1913 = vmatprep.mubr.msk.f32.mxu0 %vm770_vm1, %v673_v60 }
 0x1da   :  { %v682_v63 = vpop.f32.mrb[17].mxu1  ;;  %1914 = vmatmul.mubr.msk.f32.gmra.mrb[46].mxu0 %vm770_vm1, %v678_v61  ;;  %v688_v1 = vadd.f32 %v1866_v62, %v2344_v28 }
 0x1db   :  { %v683_v0 = vadd.f32 %v2344_v28, %v682_v63 }
 0x1dd   :  { %v1869_v2 = vpop.f32.mrb[18].mxu1  ;;  %1916 = vmatprep.mubr.msk.f32.mxu0 %vm770_vm1, %v683_v0 }
 0x1de   :  { %v692_v3 = vpop.f32.mrb[19].mxu1  ;;  %1917 = vmatmul.mubr.msk.f32.gmra.mrb[48].mxu0 %vm770_vm1, %v688_v1  ;;  %v698_v5 = vadd.f32 %v1869_v2, %v2344_v28 }
 0x1df   :  { %v693_v4 = vadd.f32 %v2344_v28, %v692_v3 }
 0x1e1   :  { %v1872_v6 = vpop.f32.mrb[20].mxu1  ;;  %1919 = vmatprep.mubr.msk.f32.mxu0 %vm770_vm1, %v693_v4 }
 0x1e2   :  { %v702_v7 = vpop.f32.mrb[21].mxu1  ;;  %1920 = vmatmul.mubr.msk.f32.gmra.mrb[50].mxu0 %vm770_vm1, %v698_v5  ;;  %v708_v9 = vadd.f32 %v1872_v6, %v2344_v28 }
 0x1e3   :  { %v703_v8 = vadd.f32 %v2344_v28, %v702_v7 }
 0x1e5   :  { %v1875_v10 = vpop.f32.mrb[22].mxu1  ;;  %1922 = vmatprep.mubr.msk.f32.mxu0 %vm770_vm1, %v703_v8 }
 0x1e6   :  { %v712_v11 = vpop.f32.mrb[23].mxu1  ;;  %1923 = vmatmul.mubr.msk.f32.gmra.mrb[52].mxu0 %vm770_vm1, %v708_v9  ;;  %v718_v13 = vadd.f32 %v1875_v10, %v2344_v28 }
 0x1e7   :  { %v713_v12 = vadd.f32 %v2344_v28, %v712_v11 }
 0x1e9   :  { %v1878_v14 = vpop.f32.mrb[24].mxu1  ;;  %1925 = vmatprep.mubr.msk.f32.mxu0 %vm770_vm1, %v713_v12 }
 0x1ea   :  { %v722_v15 = vpop.f32.mrb[25].mxu1  ;;  %1926 = vmatmul.mubr.msk.f32.gmra.mrb[54].mxu0 %vm770_vm1, %v718_v13  ;;  %v728_v17 = vadd.f32 %v1878_v14, %v2344_v28 }
 0x1eb   :  { %v723_v16 = vadd.f32 %v2344_v28, %v722_v15 }
 0x1ed   :  { %v1881_v18 = vpop.f32.mrb[26].mxu1  ;;  %1928 = vmatprep.mubr.msk.f32.mxu0 %vm770_vm1, %v723_v16 }
 0x1ee   :  { %v732_v47 = vpop.f32.mrb[27].mxu1  ;;  %1929 = vmatmul.mubr.msk.f32.gmra.mrb[56].mxu0 %vm770_vm1, %v728_v17  ;;  %v738_v20 = vadd.f32 %v1881_v18, %v2344_v28 }
 0x1ef   :  { %v733_v19 = vadd.f32 %v2344_v28, %v732_v47 }
 0x1f1   :  { %v1884_v21 = vpop.f32.mrb[28].mxu1  ;;  %1931 = vmatprep.mubr.msk.f32.mxu0 %vm770_vm1, %v733_v19 }
 0x1f2   :  { %v742_v22 = vpop.f32.mrb[29].mxu1  ;;  %1932 = vmatmul.mubr.msk.f32.gmra.mrb[58].mxu0 %vm770_vm1, %v738_v20  ;;  %v748_v24 = vadd.f32 %v1884_v21, %v2344_v28 }
 0x1f3   :  { %v743_v23 = vadd.f32 %v2344_v28, %v742_v22 }
 0x1f5   :  { %v1887_v25 = vpop.f32.mrb[30].mxu1  ;;  %1934 = vmatprep.mubr.msk.f32.mxu0 %vm770_vm1, %v743_v23 }
 0x1f6   :  { %v752_v26 = vpop.f32.mrb[31].mxu1  ;;  %1935 = vmatmul.mubr.msk.f32.gmra.mrb[60].mxu0 %vm770_vm1, %v748_v24  ;;  %v758_v29 = vadd.f32 %v1887_v25, %v2344_v28 }
 0x1f7   :  { %v753_v27 = vadd.f32 %v2344_v28, %v752_v26 }
 0x1f9   :  { %1937 = vmatprep.mubr.msk.f32.mxu0 %vm770_vm1, %v753_v27 }
 0x1fa   :  { %1938 = vmatmul.mubr.msk.f32.gmra.mrb[62].mxu0 %vm770_vm1, %v758_v29 }
 0x291   :  { %v1894_v31 = vpop.f32.mrb[32].mxu0 }
 0x292   :  { %v939_v32 = vadd.f32 %v1894_v31, %v2413_v30  ;;  %v933_v33 = vpop.f32.mrb[33].mxu0 }
 0x293   :  { %v934_v34 = vadd.f32 %v2413_v30, %v933_v33 }
 0x294   :  { %v1093_v37 = vmax.f32 %v939_v32, 0.0 }
 0x295   :  { %v1092_v35 = vmax.f32 %v934_v34, 0.0  ;;  %v1897_v36 = vpop.f32.mrb[34].mxu0 }
 0x296   :  { %v949_v28 = vadd.f32 %v1897_v36, %v2413_v30  ;;  %v943_v38 = vpop.f32.mrb[35].mxu0 }
 0x297   :  { %v944_v39 = vadd.f32 %v2413_v30, %v943_v38  ;;  %1956 = vmatprep.mubr.msk.f32.mxu1 %vm1139_vm2, %v1092_v35 }
 0x298   :  { %1957 = vmatmul.mubr.msk.f32.vlgmr.msra.gmra.mrb[32].mxu1 %vm1139_vm2, %v1093_v37  ;;  %v1095_v42 = vmax.f32 %v949_v28, 0.0 }
 0x299   :  { %v1094_v40 = vmax.f32 %v944_v39, 0.0  ;;  %v1900_v41 = vpop.f32.mrb[36].mxu0 }
 0x29a   :  { %v959_v43 = vadd.f32 %v1900_v41, %v2413_v30  ;;  %v953_v44 = vpop.f32.mrb[37].mxu0 }
 0x29b   :  { %v954_v45 = vadd.f32 %v2413_v30, %v953_v44  ;;  %1959 = vmatprep.mubr.msk.f32.mxu1 %vm1139_vm2, %v1094_v40 }
 0x29c   :  { %1960 = vmatmul.mubr.msk.f32.gmra.mrb[34].mxu1 %vm1139_vm2, %v1095_v42  ;;  %v1097_v49 = vmax.f32 %v959_v43, 0.0 }
 0x29d   :  { %v1096_v46 = vmax.f32 %v954_v45, 0.0  ;;  %v1903_v48 = vpop.f32.mrb[38].mxu0 }
 0x29e   :  { %v969_v50 = vadd.f32 %v1903_v48, %v2413_v30  ;;  %v963_v51 = vpop.f32.mrb[39].mxu0 }
 0x29f   :  { %v964_v52 = vadd.f32 %v2413_v30, %v963_v51  ;;  %1962 = vmatprep.mubr.msk.f32.mxu1 %vm1139_vm2, %v1096_v46 }
 0x2a0   :  { %1963 = vmatmul.mubr.msk.f32.gmra.mrb[36].mxu1 %vm1139_vm2, %v1097_v49  ;;  %v1099_v55 = vmax.f32 %v969_v50, 0.0 }
 0x2a1   :  { %v1098_v53 = vmax.f32 %v964_v52, 0.0  ;;  %v1906_v54 = vpop.f32.mrb[40].mxu0 }
 0x2a2   :  { %v979_v56 = vadd.f32 %v1906_v54, %v2413_v30  ;;  %v973_v57 = vpop.f32.mrb[41].mxu0 }
 0x2a3   :  { %v974_v58 = vadd.f32 %v2413_v30, %v973_v57  ;;  %1965 = vmatprep.mubr.msk.f32.mxu1 %vm1139_vm2, %v1098_v53 }
 0x2a4   :  { %1966 = vmatmul.mubr.msk.f32.gmra.mrb[38].mxu1 %vm1139_vm2, %v1099_v55  ;;  %v1101_v61 = vmax.f32 %v979_v56, 0.0 }
 0x2a5   :  { %v1100_v59 = vmax.f32 %v974_v58, 0.0  ;;  %v1909_v60 = vpop.f32.mrb[42].mxu0 }
 0x2a6   :  { %v989_v62 = vadd.f32 %v1909_v60, %v2413_v30  ;;  %v983_v63 = vpop.f32.mrb[43].mxu0 }
 0x2a7   :  { %v984_v0 = vadd.f32 %v2413_v30, %v983_v63  ;;  %1968 = vmatprep.mubr.msk.f32.mxu1 %vm1139_vm2, %v1100_v59 }
 0x2a8   :  { %1969 = vmatmul.mubr.msk.f32.gmra.mrb[40].mxu1 %vm1139_vm2, %v1101_v61  ;;  %v1103_v3 = vmax.f32 %v989_v62, 0.0 }
 0x2a9   :  { %v1102_v1 = vmax.f32 %v984_v0, 0.0  ;;  %v1912_v2 = vpop.f32.mrb[44].mxu0  ;;  %v2482_v0 = vld [vmem:[%s2652_s8] ss:$0 sm:$0xff] }
 0x2aa   :  { %v999_v4 = vadd.f32 %v1912_v2, %v2413_v30  ;;  %v993_v5 = vpop.f32.mrb[45].mxu0 }
 0x2ab   :  { %v994_v6 = vadd.f32 %v2413_v30, %v993_v5  ;;  %1971 = vmatprep.mubr.msk.f32.mxu1 %vm1139_vm2, %v1102_v1 }
 0x2ac   :  { %1972 = vmatmul.mubr.msk.f32.gmra.mrb[42].mxu1 %vm1139_vm2, %v1103_v3  ;;  %v1105_v9 = vmax.f32 %v999_v4, 0.0 }
 0x2ad   :  { %v1104_v7 = vmax.f32 %v994_v6, 0.0  ;;  %v1915_v8 = vpop.f32.mrb[46].mxu0 }
 0x2ae   :  { %v1009_v10 = vadd.f32 %v1915_v8, %v2413_v30  ;;  %v1003_v11 = vpop.f32.mrb[47].mxu0 }
 0x2af   :  { %v1004_v12 = vadd.f32 %v2413_v30, %v1003_v11  ;;  %1974 = vmatprep.mubr.msk.f32.mxu1 %vm1139_vm2, %v1104_v7 }
 0x2b0   :  { %1975 = vmatmul.mubr.msk.f32.gmra.mrb[44].mxu1 %vm1139_vm2, %v1105_v9  ;;  %v1107_v15 = vmax.f32 %v1009_v10, 0.0 }
 0x2b1   :  { %v1106_v13 = vmax.f32 %v1004_v12, 0.0  ;;  %v1918_v14 = vpop.f32.mrb[48].mxu0 }
 0x2b2   :  { %v1019_v16 = vadd.f32 %v1918_v14, %v2413_v30  ;;  %v1013_v17 = vpop.f32.mrb[49].mxu0 }
 0x2b3   :  { %v1014_v18 = vadd.f32 %v2413_v30, %v1013_v17  ;;  %1977 = vmatprep.mubr.msk.f32.mxu1 %vm1139_vm2, %v1106_v13 }
 0x2b4   :  { %1978 = vmatmul.mubr.msk.f32.gmra.mrb[46].mxu1 %vm1139_vm2, %v1107_v15  ;;  %v1109_v20 = vmax.f32 %v1019_v16, 0.0 }
 0x2b5   :  { %v1108_v47 = vmax.f32 %v1014_v18, 0.0  ;;  %v1921_v19 = vpop.f32.mrb[50].mxu0 }
 0x2b6   :  { %v1029_v21 = vadd.f32 %v1921_v19, %v2413_v30  ;;  %v1023_v22 = vpop.f32.mrb[51].mxu0 }
 0x2b7   :  { %v1024_v23 = vadd.f32 %v2413_v30, %v1023_v22  ;;  %1980 = vmatprep.mubr.msk.f32.mxu1 %vm1139_vm2, %v1108_v47 }
 0x2b8   :  { %1981 = vmatmul.mubr.msk.f32.gmra.mrb[48].mxu1 %vm1139_vm2, %v1109_v20  ;;  %v1111_v26 = vmax.f32 %v1029_v21, 0.0 }
 0x2b9   :  { %v1110_v24 = vmax.f32 %v1024_v23, 0.0  ;;  %v1924_v25 = vpop.f32.mrb[52].mxu0 }
 0x2ba   :  { %v1039_v27 = vadd.f32 %v1924_v25, %v2413_v30  ;;  %v1033_v29 = vpop.f32.mrb[53].mxu0 }
 0x2bb   :  { %v1034_v31 = vadd.f32 %v2413_v30, %v1033_v29  ;;  %1983 = vmatprep.mubr.msk.f32.mxu1 %vm1139_vm2, %v1110_v24 }
 0x2bc   :  { %1984 = vmatmul.mubr.msk.f32.gmra.mrb[50].mxu1 %vm1139_vm2, %v1111_v26  ;;  %v1113_v34 = vmax.f32 %v1039_v27, 0.0 }
 0x2bd   :  { %v1112_v32 = vmax.f32 %v1034_v31, 0.0  ;;  %v1927_v33 = vpop.f32.mrb[54].mxu0 }
 0x2be   :  { %v1049_v35 = vadd.f32 %v1927_v33, %v2413_v30  ;;  %v1043_v36 = vpop.f32.mrb[55].mxu0 }
 0x2bf   :  { %v1044_v37 = vadd.f32 %v2413_v30, %v1043_v36  ;;  %1986 = vmatprep.mubr.msk.f32.mxu1 %vm1139_vm2, %v1112_v32 }
 0x2c0   :  { %1987 = vmatmul.mubr.msk.f32.gmra.mrb[52].mxu1 %vm1139_vm2, %v1113_v34  ;;  %v1115_v39 = vmax.f32 %v1049_v35, 0.0 }
 0x2c1   :  { %v1114_v28 = vmax.f32 %v1044_v37, 0.0  ;;  %v1930_v38 = vpop.f32.mrb[56].mxu0 }
 0x2c2   :  { %v1059_v40 = vadd.f32 %v1930_v38, %v2413_v30  ;;  %v1053_v41 = vpop.f32.mrb[57].mxu0 }
 0x2c3   :  { %v1054_v42 = vadd.f32 %v2413_v30, %v1053_v41  ;;  %1989 = vmatprep.mubr.msk.f32.mxu1 %vm1139_vm2, %v1114_v28 }
 0x2c4   :  { %1990 = vmatmul.mubr.msk.f32.gmra.mrb[54].mxu1 %vm1139_vm2, %v1115_v39  ;;  %v1117_v45 = vmax.f32 %v1059_v40, 0.0 }
 0x2c5   :  { %v1116_v43 = vmax.f32 %v1054_v42, 0.0  ;;  %v1933_v44 = vpop.f32.mrb[58].mxu0 }
 0x2c6   :  { %v1069_v46 = vadd.f32 %v1933_v44, %v2413_v30  ;;  %v1063_v48 = vpop.f32.mrb[59].mxu0 }
 0x2c7   :  { %v1064_v49 = vadd.f32 %v2413_v30, %v1063_v48  ;;  %1992 = vmatprep.mubr.msk.f32.mxu1 %vm1139_vm2, %v1116_v43 }
 0x2c8   :  { %1993 = vmatmul.mubr.msk.f32.gmra.mrb[56].mxu1 %vm1139_vm2, %v1117_v45  ;;  %v1119_v52 = vmax.f32 %v1069_v46, 0.0 }
 0x2c9   :  { %v1118_v50 = vmax.f32 %v1064_v49, 0.0  ;;  %v1936_v51 = vpop.f32.mrb[60].mxu0 }
 0x2ca   :  { %v1079_v53 = vadd.f32 %v1936_v51, %v2413_v30  ;;  %v1073_v54 = vpop.f32.mrb[61].mxu0 }
 0x2cb   :  { %v1074_v55 = vadd.f32 %v2413_v30, %v1073_v54  ;;  %1995 = vmatprep.mubr.msk.f32.mxu1 %vm1139_vm2, %v1118_v50 }
 0x2cc   :  { %1996 = vmatmul.mubr.msk.f32.gmra.mrb[58].mxu1 %vm1139_vm2, %v1119_v52  ;;  %v1121_v58 = vmax.f32 %v1079_v53, 0.0 }
 0x2cd   :  { %v1120_v56 = vmax.f32 %v1074_v55, 0.0  ;;  %v1939_v57 = vpop.f32.mrb[62].mxu0 }
 0x2ce   :  { %v1089_v59 = vadd.f32 %v1939_v57, %v2413_v30  ;;  %v1083_v60 = vpop.f32.mrb[63].mxu0 }
 0x2cf   :  { %v1084_v61 = vadd.f32 %v2413_v30, %v1083_v60  ;;  %1998 = vmatprep.mubr.msk.f32.mxu1 %vm1139_vm2, %v1120_v56 }
 0x2d0   :  { %1999 = vmatmul.mubr.msk.f32.gmra.mrb[60].mxu1 %vm1139_vm2, %v1121_v58  ;;  %v1123_v63 = vmax.f32 %v1089_v59, 0.0 }
 0x2d1   :  { %v1122_v62 = vmax.f32 %v1084_v61, 0.0 }
 0x2d3   :  { %2001 = vmatprep.mubr.msk.f32.mxu1 %vm1139_vm2, %v1122_v62 }
 0x2d4   :  { %2002 = vmatmul.mubr.msk.f32.gmra.mrb[62].mxu1 %vm1139_vm2, %v1123_v63 }
 0x36b   :  { %v1958_v1 = vpop.f32.mrb[32].mxu1 }
 0x36c   :  { %v1308_v2 = vadd.f32 %v1958_v1, %v2482_v0  ;;  %v1302_v30 = vpop.f32.mrb[33].mxu1 }
 0x36d   :  { %v1303_v3 = vadd.f32 %v2482_v0, %v1302_v30 }
 0x36e   :  { %1463 = vst.msk [vmem:[%s2653_s9 + $0x8] sm:$0xff] %vm1461_vm3, %v1308_v2 }
 0x36f   :  { %1462 = vst.msk [vmem:[%s2653_s9] sm:$0xff] %vm1461_vm3, %v1303_v3  ;;  %v1961_v4 = vpop.f32.mrb[34].mxu1 }
 0x370   :  { %v1318_v5 = vadd.f32 %v1961_v4, %v2482_v0  ;;  %v1312_v6 = vpop.f32.mrb[35].mxu1 }
 0x371   :  { %v1313_v7 = vadd.f32 %v2482_v0, %v1312_v6 }
 0x372   :  { %1465 = vst.msk [vmem:[%s2653_s9 + $0x18] sm:$0xff] %vm1461_vm3, %v1318_v5 }
 0x373   :  { %1464 = vst.msk [vmem:[%s2653_s9 + $0x10] sm:$0xff] %vm1461_vm3, %v1313_v7  ;;  %v1964_v8 = vpop.f32.mrb[36].mxu1 }
 0x374   :  { %v1328_v9 = vadd.f32 %v1964_v8, %v2482_v0  ;;  %v1322_v10 = vpop.f32.mrb[37].mxu1 }
 0x375   :  { %v1323_v11 = vadd.f32 %v2482_v0, %v1322_v10 }
 0x376   :  { %1467 = vst.msk [vmem:[%s2653_s9 + $0x28] sm:$0xff] %vm1461_vm3, %v1328_v9 }
 0x377   :  { %1466 = vst.msk [vmem:[%s2653_s9 + $0x20] sm:$0xff] %vm1461_vm3, %v1323_v11  ;;  %v1967_v12 = vpop.f32.mrb[38].mxu1 }
 0x378   :  { %v1338_v13 = vadd.f32 %v1967_v12, %v2482_v0  ;;  %v1332_v14 = vpop.f32.mrb[39].mxu1 }
 0x379   :  { %v1333_v15 = vadd.f32 %v2482_v0, %v1332_v14 }
 0x37a   :  { %1469 = vst.msk [vmem:[%s2653_s9 + $0x38] sm:$0xff] %vm1461_vm3, %v1338_v13 }
 0x37b   :  { %1468 = vst.msk [vmem:[%s2653_s9 + $0x30] sm:$0xff] %vm1461_vm3, %v1333_v15  ;;  %v1970_v16 = vpop.f32.mrb[40].mxu1 }
 0x37c   :  { %v1348_v17 = vadd.f32 %v1970_v16, %v2482_v0  ;;  %v1342_v18 = vpop.f32.mrb[41].mxu1 }
 0x37d   :  { %v1343_v47 = vadd.f32 %v2482_v0, %v1342_v18 }
 0x37e   :  { %1471 = vst.msk [vmem:[%s2653_s9 + $0x48] sm:$0xff] %vm1461_vm3, %v1348_v17 }
 0x37f   :  { %1470 = vst.msk [vmem:[%s2653_s9 + $0x40] sm:$0xff] %vm1461_vm3, %v1343_v47  ;;  %v1973_v19 = vpop.f32.mrb[42].mxu1 }
 0x380   :  { %v1358_v20 = vadd.f32 %v1973_v19, %v2482_v0  ;;  %v1352_v21 = vpop.f32.mrb[43].mxu1 }
 0x381   :  { %v1353_v22 = vadd.f32 %v2482_v0, %v1352_v21 }
 0x382   :  { %1473 = vst.msk [vmem:[%s2653_s9 + $0x58] sm:$0xff] %vm1461_vm3, %v1358_v20 }
 0x383   :  { %1472 = vst.msk [vmem:[%s2653_s9 + $0x50] sm:$0xff] %vm1461_vm3, %v1353_v22  ;;  %v1976_v23 = vpop.f32.mrb[44].mxu1 }
 0x384   :  { %v1368_v24 = vadd.f32 %v1976_v23, %v2482_v0  ;;  %v1362_v25 = vpop.f32.mrb[45].mxu1 }
 0x385   :  { %v1363_v26 = vadd.f32 %v2482_v0, %v1362_v25 }
 0x386   :  { %1475 = vst.msk [vmem:[%s2653_s9 + $0x68] sm:$0xff] %vm1461_vm3, %v1368_v24 }
 0x387   :  { %1474 = vst.msk [vmem:[%s2653_s9 + $0x60] sm:$0xff] %vm1461_vm3, %v1363_v26  ;;  %v1979_v27 = vpop.f32.mrb[46].mxu1 }
 0x388   :  { %v1378_v29 = vadd.f32 %v1979_v27, %v2482_v0  ;;  %v1372_v31 = vpop.f32.mrb[47].mxu1 }
 0x389   :  { %v1373_v32 = vadd.f32 %v2482_v0, %v1372_v31 }
 0x38a   :  { %1477 = vst.msk [vmem:[%s2653_s9 + $0x78] sm:$0xff] %vm1461_vm3, %v1378_v29 }
 0x38b   :  { %1476 = vst.msk [vmem:[%s2653_s9 + $0x70] sm:$0xff] %vm1461_vm3, %v1373_v32  ;;  %v1982_v33 = vpop.f32.mrb[48].mxu1 }
 0x38c   :  { %v1388_v34 = vadd.f32 %v1982_v33, %v2482_v0  ;;  %v1382_v35 = vpop.f32.mrb[49].mxu1 }
 0x38d   :  { %v1383_v36 = vadd.f32 %v2482_v0, %v1382_v35 }
 0x38e   :  { %1479 = vst.msk [vmem:[%s2653_s9 + $0x88] sm:$0xff] %vm1461_vm3, %v1388_v34 }
 0x38f   :  { %1478 = vst.msk [vmem:[%s2653_s9 + $0x80] sm:$0xff] %vm1461_vm3, %v1383_v36  ;;  %v1985_v37 = vpop.f32.mrb[50].mxu1 }
 0x390   :  { %v1398_v28 = vadd.f32 %v1985_v37, %v2482_v0  ;;  %v1392_v38 = vpop.f32.mrb[51].mxu1 }
 0x391   :  { %v1393_v39 = vadd.f32 %v2482_v0, %v1392_v38 }
 0x392   :  { %1481 = vst.msk [vmem:[%s2653_s9 + $0x98] sm:$0xff] %vm1461_vm3, %v1398_v28 }
 0x393   :  { %1480 = vst.msk [vmem:[%s2653_s9 + $0x90] sm:$0xff] %vm1461_vm3, %v1393_v39  ;;  %v1988_v40 = vpop.f32.mrb[52].mxu1 }
 0x394   :  { %v1408_v41 = vadd.f32 %v1988_v40, %v2482_v0  ;;  %v1402_v42 = vpop.f32.mrb[53].mxu1 }
 0x395   :  { %v1403_v43 = vadd.f32 %v2482_v0, %v1402_v42 }
 0x396   :  { %1483 = vst.msk [vmem:[%s2653_s9 + $0xa8] sm:$0xff] %vm1461_vm3, %v1408_v41 }
 0x397   :  { %1482 = vst.msk [vmem:[%s2653_s9 + $0xa0] sm:$0xff] %vm1461_vm3, %v1403_v43  ;;  %v1991_v44 = vpop.f32.mrb[54].mxu1 }
 0x398   :  { %v1418_v45 = vadd.f32 %v1991_v44, %v2482_v0  ;;  %v1412_v46 = vpop.f32.mrb[55].mxu1 }
 0x399   :  { %v1413_v48 = vadd.f32 %v2482_v0, %v1412_v46 }
 0x39a   :  { %1485 = vst.msk [vmem:[%s2653_s9 + $0xb8] sm:$0xff] %vm1461_vm3, %v1418_v45 }
 0x39b   :  { %1484 = vst.msk [vmem:[%s2653_s9 + $0xb0] sm:$0xff] %vm1461_vm3, %v1413_v48  ;;  %v1994_v49 = vpop.f32.mrb[56].mxu1 }
 0x39c   :  { %v1428_v50 = vadd.f32 %v1994_v49, %v2482_v0  ;;  %v1422_v51 = vpop.f32.mrb[57].mxu1 }
 0x39d   :  { %v1423_v52 = vadd.f32 %v2482_v0, %v1422_v51 }
 0x39e   :  { %1487 = vst.msk [vmem:[%s2653_s9 + $0xc8] sm:$0xff] %vm1461_vm3, %v1428_v50 }
 0x39f   :  { %1486 = vst.msk [vmem:[%s2653_s9 + $0xc0] sm:$0xff] %vm1461_vm3, %v1423_v52  ;;  %v1997_v53 = vpop.f32.mrb[58].mxu1 }
 0x3a0   :  { %v1438_v54 = vadd.f32 %v1997_v53, %v2482_v0  ;;  %v1432_v55 = vpop.f32.mrb[59].mxu1 }
 0x3a1   :  { %v1433_v56 = vadd.f32 %v2482_v0, %v1432_v55 }
 0x3a2   :  { %1489 = vst.msk [vmem:[%s2653_s9 + $0xd8] sm:$0xff] %vm1461_vm3, %v1438_v54 }
 0x3a3   :  { %1488 = vst.msk [vmem:[%s2653_s9 + $0xd0] sm:$0xff] %vm1461_vm3, %v1433_v56  ;;  %v2000_v57 = vpop.f32.mrb[60].mxu1 }
 0x3a4   :  { %v1448_v58 = vadd.f32 %v2000_v57, %v2482_v0  ;;  %v1442_v59 = vpop.f32.mrb[61].mxu1 }
 0x3a5   :  { %v1443_v60 = vadd.f32 %v2482_v0, %v1442_v59 }
 0x3a6   :  { %1491 = vst.msk [vmem:[%s2653_s9 + $0xe8] sm:$0xff] %vm1461_vm3, %v1448_v58 }
 0x3a7   :  { %1490 = vst.msk [vmem:[%s2653_s9 + $0xe0] sm:$0xff] %vm1461_vm3, %v1443_v60  ;;  %v2003_v61 = vpop.f32.mrb[62].mxu1 }
 0x3a8   :  { %v1458_v62 = vadd.f32 %v2003_v61, %v2482_v0  ;;  %v1452_v63 = vpop.f32.mrb[63].mxu1 }
 0x3a9   :  { %v1453_v1 = vadd.f32 %v2482_v0, %v1452_v63 }
 0x3aa   :  { %1493 = vst.msk [vmem:[%s2653_s9 + $0xf8] sm:$0xff] %vm1461_vm3, %v1458_v62 }
 0x3ab   :  { %1492 = vst.msk [vmem:[%s2653_s9 + $0xf0] sm:$0xff] %vm1461_vm3, %v1453_v1 }

</bundles_post_ra>
